<compile_context>
chip_gen: v7x
topology: tpu7x:2x2x1
jax: 0.10.0
libtpu: 0.0.40
codegen_flags: <defaults>
</compile_context>

<pallas_src>
import functools

import jax
import jax.numpy as jnp
from jax import lax
from jax.experimental import pallas as pl
from jax.experimental.pallas import tpu as pltpu

EPS = 1e-12          # F.normalize default eps
NEG_INF = -1e30      # finite stand-in for -inf in the running max


def _round_up(x, m):
    return ((x + m - 1) // m) * m


def _l2norm(v):
    n = jnp.sqrt(jnp.sum(v * v, axis=-1, keepdims=True))
    return v / jnp.maximum(n, EPS)


def _lane_multiple():
    """256 on the 256-wide-MXU chips (v6e/v7x), 128 on v5e and older."""
    try:
        kind = jax.devices()[0].device_kind.lower()
    except Exception:
        return 256
    if any(tag in kind for tag in ("v2", "v3", "v4", "v5 lite", "v5lite", "v5e")):
        return 128
    return 256


def _ver2f_kernel(n_valid, mask_needed, x_ref, wt_ref, b_ref, dnT_ref,
                  m_ref, se_ref, ses_ref):
    """One (batch, chunk, N-tile) grid step of the online-softmax pooling.

    Outputs (m, se, ses) are resident accumulators: their block index is
    constant along the innermost ("arbitrary") grid axis.
    """
    n_idx = pl.program_id(2)

    @pl.when(n_idx == 0)
    def _init():
        m_ref[...] = jnp.full(m_ref.shape, NEG_INF, jnp.float32)
        se_ref[...] = jnp.zeros(se_ref.shape, jnp.float32)
        ses_ref[...] = jnp.zeros(ses_ref.shape, jnp.float32)

    # x arrives in its original dtype (no wrapper pad/cast HBM pass); cast the
    # MXU feed here, keep the square-sums in f32.
    x = x_ref[...]                                   # (n_tile, D)
    x32 = x.astype(jnp.float32)
    x_bf = x.astype(jnp.bfloat16)

    # Fold the l2-norm scales AFTER the matmuls so the MXU push never waits on
    # the EUP rsqrt (row scaling commutes with right-multiplication).
    inv_x = lax.rsqrt(jnp.maximum(jnp.sum(x32 * x32, axis=-1, keepdims=True),
                                  EPS * EPS))        # == 1 / max(||x||, eps)
    p = jnp.dot(x_bf, wt_ref[...], preferred_element_type=jnp.float32)
    y = inv_x * p + b_ref[...]                       # == l2norm(x) @ W^T + b
    inv_y = lax.rsqrt(jnp.maximum(jnp.sum(y * y, axis=-1, keepdims=True),
                                  EPS * EPS))
    s = jnp.dot(y.astype(jnp.bfloat16), dnT_ref[...],
                preferred_element_type=jnp.float32)
    sim = inv_y * s                                  # (n_tile, T_pad)

    def accumulate(sim_v):
        m_old = m_ref[...]
        m_new = jnp.maximum(m_old, jnp.max(sim_v, axis=0, keepdims=True))
        corr = jnp.exp(m_old - m_new)
        e = jnp.exp(sim_v - m_new)                   # masked rows underflow to 0
        se_ref[...] = corr * se_ref[...] + jnp.sum(e, axis=0, keepdims=True)
        ses_ref[...] = corr * ses_ref[...] + jnp.sum(e * sim_v, axis=0,
                                                     keepdims=True)
        m_ref[...] = m_new

    if mask_needed:
        # Statically known that some tiles carry padded / duplicated rows:
        # only those tiles pay the iota + select, full tiles stay unmasked.
        n_tile = x_ref.shape[0]
        start = (pl.program_id(1) * pl.num_programs(2) + n_idx) * n_tile
        is_partial = start + n_tile > n_valid

        @pl.when(is_partial)
        def _masked():
            row = lax.broadcasted_iota(jnp.int32, sim.shape, 0) + start
            accumulate(jnp.where(row < n_valid, sim, NEG_INF))

        @pl.when(jnp.logical_not(is_partial))
        def _full():
            accumulate(sim)
    else:
        accumulate(sim)


@functools.partial(jax.jit, static_argnames=("n_tile", "num_chunks"))
def ver2f_forward(x_s, w_t, bias, desc_feats, class_map, *, n_tile=512,
                  num_chunks=None):
    """x_s: [B,N,D] f32, w_t: [D,D] (in,out), bias: [D], desc_feats: [T,D],
    class_map: [T,C] class-mean map.  Returns (Y_prob, Y_hat, logits, slide)."""
    B, N, D = x_s.shape
    T, C = class_map.shape

    T_pad = _round_up(T, _lane_multiple())

    # Patch-axis tiling.  Default 512 works on every generation (v7x has half
    # the VMEM of v5e/v6e); clamp to a multiple of 16 sublanes.
    n_tile = max(16, min(_round_up(n_tile, 16), _round_up(N, 16)))
    n_steps = pl.cdiv(N, n_tile)

    # v7x has two TensorCores: for B == 1 split the N reduction into chunks on
    # a second "parallel" grid axis and merge the online-softmax partials in
    # the wrapper (no-op cost on single-core v5e/v6e).
    if num_chunks is None:
        num_chunks = 2 if B == 1 else 1
    spc = pl.cdiv(n_steps, max(1, num_chunks))       # steps per chunk
    nc = pl.cdiv(n_steps, spc)                       # effective #chunks
    mask_needed = nc * spc * n_tile > N              # static

    # Grid-invariant operands prepared once in the wrapper: normalized and
    # pre-transposed descriptor bank (lane-padded), bf16 weight, f32 bias.
    dn = desc_feats.astype(jnp.float32)
    dn = dn / jnp.maximum(jnp.linalg.norm(dn, axis=-1, keepdims=True), EPS)
    dnT = jnp.zeros((D, T_pad), jnp.bfloat16).at[:, :T].set(
        dn.T.astype(jnp.bfloat16))
    wt_b = w_t.astype(jnp.bfloat16)                  # (D_in, D_out)
    b_2d = bias.reshape(1, D).astype(jnp.float32)

    last_step = n_steps - 1

    def x_index(b, c, n):
        # Duplicated tail steps of the last chunk are clamped onto the last
        # valid tile; their rows are masked (NEG_INF) inside the kernel.
        return (b, jnp.minimum(c * spc + n, last_step), 0)

    part_shape = jax.ShapeDtypeStruct((B, nc, 1, T_pad), jnp.float32)
    part_spec = pl.BlockSpec((None, None, 1, T_pad),
                             lambda b, c, n: (b, c, 0, 0))

    m_p, se_p, ses_p = pl.pallas_call(
        functools.partial(_ver2f_kernel, N, mask_needed),
        out_shape=(part_shape, part_shape, part_shape),
        grid_spec=pltpu.PrefetchScalarGridSpec(
            num_scalar_prefetch=0,
            grid=(B, nc, spc),
            in_specs=[
                pl.BlockSpec((None, n_tile, D), x_index),          # x stream
                pl.BlockSpec((D, D), lambda b, c, n: (0, 0)),      # W^T
                pl.BlockSpec((1, D), lambda b, c, n: (0, 0)),      # bias
                pl.BlockSpec((D, T_pad), lambda b, c, n: (0, 0)),  # desc^T
            ],
            out_specs=(part_spec, part_spec, part_spec),
        ),
        compiler_params=pltpu.CompilerParams(
            dimension_semantics=("parallel", "parallel", "arbitrary"),
            # Real footprint is a few MiB; 32 MiB leaves headroom on every
            # generation (v7x only has 64 MiB of physical VMEM).
            vmem_limit_bytes=32 * 1024 * 1024,
        ),
    )(x_s, wt_b, b_2d, dnT)

    # Merge the per-chunk online-softmax partials and finalize with an EXACT
    # division (runs once per slide; no approx reciprocal on the logits path).
    m_p, se_p, ses_p = m_p[:, :, 0, :], se_p[:, :, 0, :], ses_p[:, :, 0, :]
    m_g = jnp.max(m_p, axis=1, keepdims=True)                    # (B,1,T_pad)
    scale = jnp.exp(m_p - m_g)
    se = jnp.sum(se_p * scale, axis=1)
    ses = jnp.sum(ses_p * scale, axis=1)
    slide = (ses / se)[:, None, :T]                              # (B,1,T)

    # Tiny (T x C) class-averaging + softmax/argmax epilogue in plain JAX.
    logits = jnp.einsum("bt,tc->bc", slide[:, 0, :],
                        class_map.astype(jnp.float32))
    Y_prob = jax.nn.softmax(logits, axis=-1)
    Y_hat = jnp.argmax(Y_prob, axis=-1)
    # TODO(synk): CrossEntropyLoss (label branch) stays in plain JAX if needed;
    # this mirrors the module's label=None path (loss=None).
    return Y_prob, Y_hat, logits, slide


def reference_forward(x_s, w_t, bias, desc_feats, class_map):
    """Pure-JAX (f32) reference mirroring the PyTorch forward semantics."""
    xn = _l2norm(x_s)
    y = _l2norm(jnp.einsum("bnd,de->bne", xn, w_t) + bias.reshape(1, 1, -1))
    dn = _l2norm(desc_feats)
    sim = jnp.einsum("bnd,td->bnt", y, dn)
    w = jax.nn.softmax(sim, axis=1)
    slide = jnp.sum(w * sim, axis=1, keepdims=True)              # [B, 1, T]
    logits = jnp.einsum("bt,tc->bc", slide[:, 0, :], class_map)
    Y_prob = jax.nn.softmax(logits, axis=1)
    Y_hat = jnp.argmax(Y_prob, axis=1)
    return Y_prob, Y_hat, logits, slide


def _build_case(key, B, N, D, C, descs_per_class):
    k_x, k_w, k_b, k_d = jax.random.split(key, 4)
    T = C * descs_per_class
    x_s = jax.random.normal(k_x, (B, N, D), dtype=jnp.float32)
    w = jax.random.normal(k_w, (D, D), dtype=jnp.float32) * 0.05   # Linear(D, D)
    w_t = w.T                                                      # (in, out)
    bias = jax.random.normal(k_b, (D,), dtype=jnp.float32) * 0.01
    desc_raw = jax.random.normal(k_d, (T, D), dtype=jnp.float32)
    desc = desc_raw / jnp.linalg.norm(desc_raw, axis=-1, keepdims=True)
    cmap = jnp.zeros((T, C), dtype=jnp.float32)                    # class-mean map
    for c in range(C):
        s, e = c * descs_per_class, (c + 1) * descs_per_class
        cmap = cmap.at[s:e, c].set(1.0 / descs_per_class)
    return x_s, w_t, bias, desc, cmap


def _check(tag, outs, refs, atol=5e-2):
    Y_prob, Y_hat, logits, slide = outs
    Yp_r, Yh_r, lg_r, sl_r = refs
    assert jnp.allclose(slide, sl_r, atol=atol), f"{tag}: slide mismatch"
    assert jnp.allclose(logits, lg_r, atol=atol), f"{tag}: logits mismatch"
    assert jnp.allclose(Y_prob, Yp_r, atol=atol), f"{tag}: Y_prob mismatch"
    # Y_hat must match whenever the reference argmax is not a near-tie
    # (bf16 MXU inputs can legitimately flip near-ties).
    sorted_lg = jnp.sort(lg_r, axis=-1)
    gap = sorted_lg[:, -1] - sorted_lg[:, -2]
    ok = (Y_hat == Yh_r) | (gap < 1e-1)
    assert bool(jnp.all(ok)), f"{tag}: Y_hat mismatch"


if __name__ == "__main__":
    key = jax.random.PRNGKey(0)
    k1, k2, k3 = jax.random.split(key, 3)

    # Case 1: small bag, single (partial) N-tile, B>1 so B axis is parallel.
    args1 = _build_case(k1, B=2, N=8, D=32, C=3, descs_per_class=2)
    outs1 = ver2f_forward(*args1)
    jax.block_until_ready(outs1)
    _check("case1", outs1, reference_forward(*args1))

    # Case 2: multi-tile online softmax with two reduction chunks, a partial
    # remainder tile and a clamped (fully masked) duplicated tail tile.
    args2 = _build_case(k2, B=1, N=200, D=32, C=3, descs_per_class=2)
    outs2 = ver2f_forward(*args2, n_tile=80, num_chunks=2)
    jax.block_until_ready(outs2)
    _check("case2", outs2, reference_forward(*args2))

    # Case 3: exactly divisible tiling -> static unmasked fast path + merge.
    args3 = _build_case(k3, B=1, N=256, D=32, C=3, descs_per_class=2)
    outs3 = ver2f_forward(*args3, n_tile=64, num_chunks=2)
    jax.block_until_ready(outs3)
    _check("case3", outs3, reference_forward(*args3))

    print("KERNEL_OK")
</pallas_src>

<mosaic_0001>
module attributes {stable_mosaic.version = 11 : i64} {
  func.func @_ver2f_kernel(%arg0: i32, %arg1: i32, %arg2: i32, %arg3: memref<1x16x32xf32, #tpu.memory_space<vmem>>, %arg4: memref<32x32xbf16, #tpu.memory_space<vmem>>, %arg5: memref<1x32xf32, #tpu.memory_space<vmem>>, %arg6: memref<32x256xbf16, #tpu.memory_space<vmem>>, %arg7: memref<1x1x1x256xf32, #tpu.memory_space<vmem>>, %arg8: memref<1x1x1x256xf32, #tpu.memory_space<vmem>>, %arg9: memref<1x1x1x256xf32, #tpu.memory_space<vmem>>) attributes {dimension_semantics = [#tpu.dimension_semantics<parallel>, #tpu.dimension_semantics<parallel>, #tpu.dimension_semantics<arbitrary>], iteration_bounds = array<i64: 2, 1, 1>, scalar_prefetch = 0 : i64, scratch_operands = 0 : i64, tpu.core_type = #tpu.core_type<tc>, window_params = [{transform_indices = @transform_0, window_bounds = array<i64: 1, 16, 32>}, {pipeline_mode = #tpu.pipeline_mode<synchronous>, transform_indices = @transform_1, window_bounds = array<i64: 32, 32>}, {pipeline_mode = #tpu.pipeline_mode<synchronous>, transform_indices = @transform_2, window_bounds = array<i64: 1, 32>}, {pipeline_mode = #tpu.pipeline_mode<synchronous>, transform_indices = @transform_3, window_bounds = array<i64: 32, 256>}, {transform_indices = @transform_4, window_bounds = array<i64: 1, 1, 1, 256>}, {transform_indices = @transform_5, window_bounds = array<i64: 1, 1, 1, 256>}, {transform_indices = @transform_6, window_bounds = array<i64: 1, 1, 1, 256>}]} {
    %c0_i32 = arith.constant 0 : i32
    %0 = arith.cmpi eq, %arg2, %c0_i32 : i32
    %1 = arith.extui %0 : i1 to i32
    %c0_i32_0 = arith.constant 0 : i32
    %2 = arith.cmpi ne, %1, %c0_i32_0 : i32
    scf.if %2 {
      %cst_17 = arith.constant -1.000000e+30 : f32
      %40 = vector.broadcast %cst_17 : f32 to vector<1x256xf32>
      %c0_18 = arith.constant 0 : index
      %c0_19 = arith.constant 0 : index
      %c0_20 = arith.constant 0 : index
      %c0_21 = arith.constant 0 : index
      %41 = vector.load %arg7[%c0_18, %c0_19, %c0_20, %c0_21] : memref<1x1x1x256xf32, #tpu.memory_space<vmem>>, vector<1x1x1x256xf32>
      %42 = vector.shape_cast %41 : vector<1x1x1x256xf32> to vector<1x256xf32>
      %43 = vector.shape_cast %40 : vector<1x256xf32> to vector<1x1x1x256xf32>
      tpu.vector_store %arg7[%c0_18, %c0_19, %c0_20, %c0_21], %43 {strides = array<i32>} : memref<1x1x1x256xf32, #tpu.memory_space<vmem>>, vector<1x1x1x256xf32>,
      %cst_22 = arith.constant 0.000000e+00 : f32
      %44 = vector.broadcast %cst_22 : f32 to vector<1x256xf32>
      %c0_23 = arith.constant 0 : index
      %c0_24 = arith.constant 0 : index
      %c0_25 = arith.constant 0 : index
      %c0_26 = arith.constant 0 : index
      %45 = vector.load %arg8[%c0_23, %c0_24, %c0_25, %c0_26] : memref<1x1x1x256xf32, #tpu.memory_space<vmem>>, vector<1x1x1x256xf32>
      %46 = vector.shape_cast %45 : vector<1x1x1x256xf32> to vector<1x256xf32>
      %47 = vector.shape_cast %44 : vector<1x256xf32> to vector<1x1x1x256xf32>
      tpu.vector_store %arg8[%c0_23, %c0_24, %c0_25, %c0_26], %47 {strides = array<i32>} : memref<1x1x1x256xf32, #tpu.memory_space<vmem>>, vector<1x1x1x256xf32>,
      %cst_27 = arith.constant 0.000000e+00 : f32
      %48 = vector.broadcast %cst_27 : f32 to vector<1x256xf32>
      %c0_28 = arith.constant 0 : index
      %c0_29 = arith.constant 0 : index
      %c0_30 = arith.constant 0 : index
      %c0_31 = arith.constant 0 : index
      %49 = vector.load %arg9[%c0_28, %c0_29, %c0_30, %c0_31] : memref<1x1x1x256xf32, #tpu.memory_space<vmem>>, vector<1x1x1x256xf32>
      %50 = vector.shape_cast %49 : vector<1x1x1x256xf32> to vector<1x256xf32>
      %51 = vector.shape_cast %48 : vector<1x256xf32> to vector<1x1x1x256xf32>
      tpu.vector_store %arg9[%c0_28, %c0_29, %c0_30, %c0_31], %51 {strides = array<i32>} : memref<1x1x1x256xf32, #tpu.memory_space<vmem>>, vector<1x1x1x256xf32>,
    } else {
    }
    %c0 = arith.constant 0 : index
    %c0_1 = arith.constant 0 : index
    %c0_2 = arith.constant 0 : index
    %3 = vector.load %arg3[%c0, %c0_1, %c0_2] : memref<1x16x32xf32, #tpu.memory_space<vmem>>, vector<1x16x32xf32>
    %4 = vector.shape_cast %3 : vector<1x16x32xf32> to vector<16x32xf32>
    %5 = arith.truncf %4 : vector<16x32xf32> to vector<16x32xbf16>
    %6 = arith.mulf %4, %4 : vector<16x32xf32>
    %cst = arith.constant dense<0.000000e+00> : vector<16xf32>
    %7 = vector.multi_reduction <add>, %6, %cst [1] : vector<16x32xf32> to vector<16xf32>
    %8 = vector.shape_cast %7 : vector<16xf32> to vector<16x1xf32>
    %cst_3 = arith.constant 1.000000e-24 : f32
    %9 = vector.broadcast %cst_3 : f32 to vector<16x1xf32>
    %10 = arith.maximumf %8, %9 : vector<16x1xf32>
    %11 = math.rsqrt %10 : vector<16x1xf32>
    %c0_4 = arith.constant 0 : index
    %c0_5 = arith.constant 0 : index
    %12 = vector.load %arg4[%c0_4, %c0_5] : memref<32x32xbf16, #tpu.memory_space<vmem>>, vector<32x32xbf16>
    %cst_6 = arith.constant dense<0.000000e+00> : vector<16x32xf32>
    %13 = tpu.matmul %5, %12, %cst_6 {dimension_numbers = #tpu.dot_dimension_numbers<[1], [0], [0], [1], [0, 0, 1, 1], [], []>} : vector<16x32xbf16>, vector<32x32xbf16>, vector<16x32xf32> -> vector<16x32xf32>
    %14 = vector.broadcast %11 : vector<16x1xf32> to vector<16x32xf32>
    %15 = arith.mulf %14, %13 : vector<16x32xf32>
    %c0_7 = arith.constant 0 : index
    %c0_8 = arith.constant 0 : index
    %16 = vector.load %arg5[%c0_7, %c0_8] : memref<1x32xf32, #tpu.memory_space<vmem>>, vector<1x32xf32>
    %17 = vector.broadcast %16 : vector<1x32xf32> to vector<16x32xf32>
    %18 = arith.addf %15, %17 : vector<16x32xf32>
    %19 = arith.mulf %18, %18 : vector<16x32xf32>
    %cst_9 = arith.constant dense<0.000000e+00> : vector<16xf32>
    %20 = vector.multi_reduction <add>, %19, %cst_9 [1] : vector<16x32xf32> to vector<16xf32>
    %21 = vector.shape_cast %20 : vector<16xf32> to vector<16x1xf32>
    %cst_10 = arith.constant 1.000000e-24 : f32
    %22 = vector.broadcast %cst_10 : f32 to vector<16x1xf32>
    %23 = arith.maximumf %21, %22 : vector<16x1xf32>
    %24 = math.rsqrt %23 : vector<16x1xf32>
    %25 = arith.truncf %18 : vector<16x32xf32> to vector<16x32xbf16>
    %c0_11 = arith.constant 0 : index
    %c0_12 = arith.constant 0 : index
    %26 = vector.load %arg6[%c0_11, %c0_12] : memref<32x256xbf16, #tpu.memory_space<vmem>>, vector<32x256xbf16>
    %cst_13 = arith.constant dense<0.000000e+00> : vector<16x256xf32>
    %27 = tpu.matmul %25, %26, %cst_13 {dimension_numbers = #tpu.dot_dimension_numbers<[1], [0], [0], [1], [0, 0, 1, 1], [], []>} : vector<16x32xbf16>, vector<32x256xbf16>, vector<16x256xf32> -> vector<16x256xf32>
    %28 = vector.broadcast %24 : vector<16x1xf32> to vector<16x256xf32>
    %29 = arith.mulf %28, %27 : vector<16x256xf32>
    %c1_i32 = arith.constant 1 : i32
    %30 = arith.muli %arg1, %c1_i32 : i32
    %31 = arith.addi %30, %arg2 : i32
    %c16_i32 = arith.constant 16 : i32
    %32 = arith.muli %31, %c16_i32 : i32
    %c16_i32_14 = arith.constant 16 : i32
    %33 = arith.addi %32, %c16_i32_14 : i32
    %c8_i32 = arith.constant 8 : i32
    %34 = arith.cmpi sgt, %33, %c8_i32 : i32
    %35 = arith.extui %34 : i1 to i32
    %c0_i32_15 = arith.constant 0 : i32
    %36 = arith.cmpi ne, %35, %c0_i32_15 : i32
    scf.if %36 {
      %40 = tpu.iota {dimensions = array<i32: 0>} : vector<16x256xi32>
      %41 = vector.broadcast %32 : i32 to vector<16x256xi32>
      %42 = arith.addi %40, %41 : vector<16x256xi32>
      %c8_i32_17 = arith.constant 8 : i32
      %43 = vector.broadcast %c8_i32_17 : i32 to vector<16x256xi32>
      %44 = arith.cmpi slt, %42, %43 : vector<16x256xi32>
      %cst_18 = arith.constant -1.000000e+30 : f32
      %45 = vector.broadcast %cst_18 : f32 to vector<16x256xf32>
      %46 = arith.select %44, %29, %45 : vector<16x256xi1>, vector<16x256xf32>
      %c0_19 = arith.constant 0 : index
      %c0_20 = arith.constant 0 : index
      %c0_21 = arith.constant 0 : index
      %c0_22 = arith.constant 0 : index
      %47 = vector.load %arg7[%c0_19, %c0_20, %c0_21, %c0_22] : memref<1x1x1x256xf32, #tpu.memory_space<vmem>>, vector<1x1x1x256xf32>
      %48 = vector.shape_cast %47 : vector<1x1x1x256xf32> to vector<1x256xf32>
      %cst_23 = arith.constant dense<0xFF800000> : vector<256xf32>
      %49 = vector.multi_reduction <maximumf>, %46, %cst_23 [0] : vector<16x256xf32> to vector<256xf32>
      %50 = vector.shape_cast %49 : vector<256xf32> to vector<1x256xf32>
      %51 = arith.maximumf %48, %50 : vector<1x256xf32>
      %52 = arith.subf %48, %51 : vector<1x256xf32>
      %53 = math.exp %52 : vector<1x256xf32>
      %54 = vector.broadcast %51 : vector<1x256xf32> to vector<16x256xf32>
      %55 = arith.subf %46, %54 : vector<16x256xf32>
      %56 = math.exp %55 : vector<16x256xf32>
      %c0_24 = arith.constant 0 : index
      %c0_25 = arith.constant 0 : index
      %c0_26 = arith.constant 0 : index
      %c0_27 = arith.constant 0 : index
      %57 = vector.load %arg8[%c0_24, %c0_25, %c0_26, %c0_27] : memref<1x1x1x256xf32, #tpu.memory_space<vmem>>, vector<1x1x1x256xf32>
      %58 = vector.shape_cast %57 : vector<1x1x1x256xf32> to vector<1x256xf32>
      %59 = arith.mulf %53, %58 : vector<1x256xf32>
      %cst_28 = arith.constant dense<0.000000e+00> : vector<256xf32>
      %60 = vector.multi_reduction <add>, %56, %cst_28 [0] : vector<16x256xf32> to vector<256xf32>
      %61 = vector.shape_cast %60 : vector<256xf32> to vector<1x256xf32>
      %62 = arith.addf %59, %61 : vector<1x256xf32>
      %c0_29 = arith.constant 0 : index
      %c0_30 = arith.constant 0 : index
      %c0_31 = arith.constant 0 : index
      %c0_32 = arith.constant 0 : index
      %63 = vector.load %arg8[%c0_29, %c0_30, %c0_31, %c0_32] : memref<1x1x1x256xf32, #tpu.memory_space<vmem>>, vector<1x1x1x256xf32>
      %64 = vector.shape_cast %63 : vector<1x1x1x256xf32> to vector<1x256xf32>
      %65 = vector.shape_cast %62 : vector<1x256xf32> to vector<1x1x1x256xf32>
      tpu.vector_store %arg8[%c0_29, %c0_30, %c0_31, %c0_32], %65 {strides = array<i32>} : memref<1x1x1x256xf32, #tpu.memory_space<vmem>>, vector<1x1x1x256xf32>,
      %c0_33 = arith.constant 0 : index
      %c0_34 = arith.constant 0 : index
      %c0_35 = arith.constant 0 : index
      %c0_36 = arith.constant 0 : index
      %66 = vector.load %arg9[%c0_33, %c0_34, %c0_35, %c0_36] : memref<1x1x1x256xf32, #tpu.memory_space<vmem>>, vector<1x1x1x256xf32>
      %67 = vector.shape_cast %66 : vector<1x1x1x256xf32> to vector<1x256xf32>
      %68 = arith.mulf %53, %67 : vector<1x256xf32>
      %69 = arith.mulf %56, %46 : vector<16x256xf32>
      %cst_37 = arith.constant dense<0.000000e+00> : vector<256xf32>
      %70 = vector.multi_reduction <add>, %69, %cst_37 [0] : vector<16x256xf32> to vector<256xf32>
      %71 = vector.shape_cast %70 : vector<256xf32> to vector<1x256xf32>
      %72 = arith.addf %68, %71 : vector<1x256xf32>
      %c0_38 = arith.constant 0 : index
      %c0_39 = arith.constant 0 : index
      %c0_40 = arith.constant 0 : index
      %c0_41 = arith.constant 0 : index
      %73 = vector.load %arg9[%c0_38, %c0_39, %c0_40, %c0_41] : memref<1x1x1x256xf32, #tpu.memory_space<vmem>>, vector<1x1x1x256xf32>
      %74 = vector.shape_cast %73 : vector<1x1x1x256xf32> to vector<1x256xf32>
      %75 = vector.shape_cast %72 : vector<1x256xf32> to vector<1x1x1x256xf32>
      tpu.vector_store %arg9[%c0_38, %c0_39, %c0_40, %c0_41], %75 {strides = array<i32>} : memref<1x1x1x256xf32, #tpu.memory_space<vmem>>, vector<1x1x1x256xf32>,
      %c0_42 = arith.constant 0 : index
      %c0_43 = arith.constant 0 : index
      %c0_44 = arith.constant 0 : index
      %c0_45 = arith.constant 0 : index
      %76 = vector.load %arg7[%c0_42, %c0_43, %c0_44, %c0_45] : memref<1x1x1x256xf32, #tpu.memory_space<vmem>>, vector<1x1x1x256xf32>
      %77 = vector.shape_cast %76 : vector<1x1x1x256xf32> to vector<1x256xf32>
      %78 = vector.shape_cast %51 : vector<1x256xf32> to vector<1x1x1x256xf32>
      tpu.vector_store %arg7[%c0_42, %c0_43, %c0_44, %c0_45], %78 {strides = array<i32>} : memref<1x1x1x256xf32, #tpu.memory_space<vmem>>, vector<1x1x1x256xf32>,
    } else {
    }
    %true = arith.constant true
    %37 = arith.xori %34, %true : i1
    %38 = arith.extui %37 : i1 to i32
    %c0_i32_16 = arith.constant 0 : i32
    %39 = arith.cmpi ne, %38, %c0_i32_16 : i32
    scf.if %39 {
      %c0_17 = arith.constant 0 : index
      %c0_18 = arith.constant 0 : index
      %c0_19 = arith.constant 0 : index
      %c0_20 = arith.constant 0 : index
      %40 = vector.load %arg7[%c0_17, %c0_18, %c0_19, %c0_20] : memref<1x1x1x256xf32, #tpu.memory_space<vmem>>, vector<1x1x1x256xf32>
      %41 = vector.shape_cast %40 : vector<1x1x1x256xf32> to vector<1x256xf32>
      %cst_21 = arith.constant dense<0xFF800000> : vector<256xf32>
      %42 = vector.multi_reduction <maximumf>, %29, %cst_21 [0] : vector<16x256xf32> to vector<256xf32>
      %43 = vector.shape_cast %42 : vector<256xf32> to vector<1x256xf32>
      %44 = arith.maximumf %41, %43 : vector<1x256xf32>
      %45 = arith.subf %41, %44 : vector<1x256xf32>
      %46 = math.exp %45 : vector<1x256xf32>
      %47 = vector.broadcast %44 : vector<1x256xf32> to vector<16x256xf32>
      %48 = arith.subf %29, %47 : vector<16x256xf32>
      %49 = math.exp %48 : vector<16x256xf32>
      %c0_22 = arith.constant 0 : index
      %c0_23 = arith.constant 0 : index
      %c0_24 = arith.constant 0 : index
      %c0_25 = arith.constant 0 : index
      %50 = vector.load %arg8[%c0_22, %c0_23, %c0_24, %c0_25] : memref<1x1x1x256xf32, #tpu.memory_space<vmem>>, vector<1x1x1x256xf32>
      %51 = vector.shape_cast %50 : vector<1x1x1x256xf32> to vector<1x256xf32>
      %52 = arith.mulf %46, %51 : vector<1x256xf32>
      %cst_26 = arith.constant dense<0.000000e+00> : vector<256xf32>
      %53 = vector.multi_reduction <add>, %49, %cst_26 [0] : vector<16x256xf32> to vector<256xf32>
      %54 = vector.shape_cast %53 : vector<256xf32> to vector<1x256xf32>
      %55 = arith.addf %52, %54 : vector<1x256xf32>
      %c0_27 = arith.constant 0 : index
      %c0_28 = arith.constant 0 : index
      %c0_29 = arith.constant 0 : index
      %c0_30 = arith.constant 0 : index
      %56 = vector.load %arg8[%c0_27, %c0_28, %c0_29, %c0_30] : memref<1x1x1x256xf32, #tpu.memory_space<vmem>>, vector<1x1x1x256xf32>
      %57 = vector.shape_cast %56 : vector<1x1x1x256xf32> to vector<1x256xf32>
      %58 = vector.shape_cast %55 : vector<1x256xf32> to vector<1x1x1x256xf32>
      tpu.vector_store %arg8[%c0_27, %c0_28, %c0_29, %c0_30], %58 {strides = array<i32>} : memref<1x1x1x256xf32, #tpu.memory_space<vmem>>, vector<1x1x1x256xf32>,
      %c0_31 = arith.constant 0 : index
      %c0_32 = arith.constant 0 : index
      %c0_33 = arith.constant 0 : index
      %c0_34 = arith.constant 0 : index
      %59 = vector.load %arg9[%c0_31, %c0_32, %c0_33, %c0_34] : memref<1x1x1x256xf32, #tpu.memory_space<vmem>>, vector<1x1x1x256xf32>
      %60 = vector.shape_cast %59 : vector<1x1x1x256xf32> to vector<1x256xf32>
      %61 = arith.mulf %46, %60 : vector<1x256xf32>
      %62 = arith.mulf %49, %29 : vector<16x256xf32>
      %cst_35 = arith.constant dense<0.000000e+00> : vector<256xf32>
      %63 = vector.multi_reduction <add>, %62, %cst_35 [0] : vector<16x256xf32> to vector<256xf32>
      %64 = vector.shape_cast %63 : vector<256xf32> to vector<1x256xf32>
      %65 = arith.addf %61, %64 : vector<1x256xf32>
      %c0_36 = arith.constant 0 : index
      %c0_37 = arith.constant 0 : index
      %c0_38 = arith.constant 0 : index
      %c0_39 = arith.constant 0 : index
      %66 = vector.load %arg9[%c0_36, %c0_37, %c0_38, %c0_39] : memref<1x1x1x256xf32, #tpu.memory_space<vmem>>, vector<1x1x1x256xf32>
      %67 = vector.shape_cast %66 : vector<1x1x1x256xf32> to vector<1x256xf32>
      %68 = vector.shape_cast %65 : vector<1x256xf32> to vector<1x1x1x256xf32>
      tpu.vector_store %arg9[%c0_36, %c0_37, %c0_38, %c0_39], %68 {strides = array<i32>} : memref<1x1x1x256xf32, #tpu.memory_space<vmem>>, vector<1x1x1x256xf32>,
      %c0_40 = arith.constant 0 : index
      %c0_41 = arith.constant 0 : index
      %c0_42 = arith.constant 0 : index
      %c0_43 = arith.constant 0 : index
      %69 = vector.load %arg7[%c0_40, %c0_41, %c0_42, %c0_43] : memref<1x1x1x256xf32, #tpu.memory_space<vmem>>, vector<1x1x1x256xf32>
      %70 = vector.shape_cast %69 : vector<1x1x1x256xf32> to vector<1x256xf32>
      %71 = vector.shape_cast %44 : vector<1x256xf32> to vector<1x1x1x256xf32>
      tpu.vector_store %arg7[%c0_40, %c0_41, %c0_42, %c0_43], %71 {strides = array<i32>} : memref<1x1x1x256xf32, #tpu.memory_space<vmem>>, vector<1x1x1x256xf32>,
    } else {
    }
    return
  }
  func.func @transform_0(%arg0: i32, %arg1: i32, %arg2: i32) -> (i32, i32, i32) {
    %c1_i32 = arith.constant 1 : i32
    %0 = arith.muli %arg1, %c1_i32 : i32
    %1 = arith.addi %0, %arg2 : i32
    %c0_i32 = arith.constant 0 : i32
    %2 = arith.minsi %1, %c0_i32 : i32
    %c0_i32_0 = arith.constant 0 : i32
    %c0_i32_1 = arith.constant 0 : i32
    return %arg0, %2, %c0_i32_0 : i32, i32, i32
  }
  func.func @transform_1(%arg0: i32, %arg1: i32, %arg2: i32) -> (i32, i32) {
    %c0_i32 = arith.constant 0 : i32
    %c0_i32_0 = arith.constant 0 : i32
    %c0_i32_1 = arith.constant 0 : i32
    return %c0_i32, %c0_i32_0 : i32, i32
  }
  func.func @transform_2(%arg0: i32, %arg1: i32, %arg2: i32) -> (i32, i32) {
    %c0_i32 = arith.constant 0 : i32
    %c0_i32_0 = arith.constant 0 : i32
    %c0_i32_1 = arith.constant 0 : i32
    return %c0_i32, %c0_i32_0 : i32, i32
  }
  func.func @transform_3(%arg0: i32, %arg1: i32, %arg2: i32) -> (i32, i32) {
    %c0_i32 = arith.constant 0 : i32
    %c0_i32_0 = arith.constant 0 : i32
    %c0_i32_1 = arith.constant 0 : i32
    return %c0_i32, %c0_i32_0 : i32, i32
  }
  func.func @transform_4(%arg0: i32, %arg1: i32, %arg2: i32) -> (i32, i32, i32, i32) {
    %c0_i32 = arith.constant 0 : i32
    %c0_i32_0 = arith.constant 0 : i32
    %c0_i32_1 = arith.constant 0 : i32
    return %arg0, %arg1, %c0_i32, %c0_i32_0 : i32, i32, i32, i32
  }
  func.func @transform_5(%arg0: i32, %arg1: i32, %arg2: i32) -> (i32, i32, i32, i32) {
    %c0_i32 = arith.constant 0 : i32
    %c0_i32_0 = arith.constant 0 : i32
    %c0_i32_1 = arith.constant 0 : i32
    return %arg0, %arg1, %c0_i32, %c0_i32_0 : i32, i32, i32, i32
  }
  func.func @transform_6(%arg0: i32, %arg1: i32, %arg2: i32) -> (i32, i32, i32, i32) {
    %c0_i32 = arith.constant 0 : i32
    %c0_i32_0 = arith.constant 0 : i32
    %c0_i32_1 = arith.constant 0 : i32
    return %arg0, %arg1, %c0_i32, %c0_i32_0 : i32, i32, i32, i32
  }
}

</mosaic_0001>

<bundles_post_ra>
// kernel: ver2f_forward.1
= control target key start
LH: loop header
LB: loop body
LE: loop exit
PB: predicated region body
PF: predicated region fallthrough
CT: control target
= control target key end

     0   :  { %s1180_s21 = smov 0   ;;  %s1182_s22 = smov 0   ;;  %s1286_s0 = inlined_call_operand.vmem [shape: f32[2,8,32], index: 0, kind: input, shape index: {}]   ;;  %s1287_s1 = inlined_call_operand.vmem [shape: bf16[32,32], index: 1, kind: input, shape index: {}]   ;;  %s1288_s2 = inlined_call_operand.vmem [shape: f32[1,32], index: 2, kind: input, shape index: {}]   ;;  %s1289_s3 = inlined_call_operand.vmem [shape: bf16[32,256], index: 3, kind: input, shape index: {}]   ;;  %s1290_s4 = inlined_call_operand.vmem [shape: f32[2,1,1,256], index: 4, kind: output, shape index: {0}]   ;;  %s1291_s5 = inlined_call_operand.vmem [shape: f32[2,1,1,256], index: 5, kind: output, shape index: {1}]   ;;  %s1292_s6 = inlined_call_operand.vmem [shape: f32[2,1,1,256], index: 6, kind: output, shape index: {2}]  }
   0x1   :  { %s1184_s23 = smov 0  }
   0x2 LB: > { %s36_s24 = sadd.s32 1, %s1134_s22  ;;  %p1036_p0 = scmp.ge.s32.totalorder %s1138_s23, 1  ;;  %s1138_s23 = sphi %s1184_s23, %s17_s23   ;;  %s1134_s22 = sphi %s1182_s22, %s1296_s22   ;;  %s1130_s21 = sphi %s1180_s21, %s1295_s21  }
   0x3   : > { %p38_p1 = scmp.ge.s32.totalorder %s36_s24, 2  ;;  %p264_p2 = scmp.lt.s32.totalorder %s1138_s23, 3 }
   0x5   : > { %s1298_s24 = smov (%p38_p1, %s36_s24), 0  ;;  %p265_p3 = pnand %p1036_p0, %p264_p2 }
   0x6   : > { %v1092_v0 = vld [vmem:[%s1287_s1] sm:$0xff] (!%p265_p3)   ;;  %v1140_v1 = vmov (!%p265_p3), 0.0   ;;  %v369_v2 = vlaneseq (!%p265_p3)  ;;  %v1093_v3 = vld [vmem:[%s1287_s1 + $0x8] sm:$0xff] (!%p265_p3)   ;;  %vm1141_vm0 = vmmov (!%p265_p3), 0   ;;  %p327_p4 = scmp.lt.s32.totalorder (!%p265_p3), %s1130_s21, 1  ;;  %vm381_vm2 = vcmask (!%p265_p3), 261120  }
   0x7   : > { %268 = sbr.rel (%p265_p3) target bundleno = 522 (0x20a), region = 36  ;;  %1055 = vmatprep.subr.bf16.mxu0 (!%p265_p3), %v1140_v1  ;;  %1059 = vmatprep.mubr.msk.bf16.mxu0 (!%p265_p3), %vm1141_vm0, %v1140_v1  ;;  %v1142_v5 = vmov (!%p265_p3), -1e+30   ;;  %v1094_v13 = vld [vmem:[%s1289_s3 + $0x4] ss:$8 sps:$4 sm:$0xff] (!%p265_p3)   ;;  %v1143_v17 = vmov (!%p265_p3), 0  }
   0x8   : > { %1056 = vmatpush3.bf16.msra.mxu0 (!%p265_p3), %v1092_v0  ;;  %vm1205_vm1 = vcmp.lt.s32.totalorder (!%p265_p3), %v369_v2, 256  ;;  %v1096_v14 = vld [vmem:[%s1289_s3] ss:$8 sps:$4 sm:$0xff] (!%p265_p3)   ;;  %503 = vmatprep.subr.bf16.mxu1 (!%p265_p3), %v1094_v13  ;;  %v1097_v15 = vld [vmem:[%s1289_s3 + $0x14] ss:$8 sps:$4 sm:$0xff] (!%p265_p3)   ;;  %v591_v58 = vshrl.u32 (!%p265_p3), %v369_v2, 7 }
   0x9   : > { %1057 = vmatprep.subr.bf16.mxu0 (!%p265_p3), %v1140_v1  ;;  %504 = vmatpush1.bf16.msra.mxu1 (!%p265_p3), %v1096_v14  ;;  %v1099_v16 = vld [vmem:[%s1289_s3 + $0x10] ss:$8 sps:$4 sm:$0xff] (!%p265_p3)   ;;  %v1044_v25 = vld [vmem:[%s1288_s2] ss:$0 sm:$0xff] (!%p265_p3)  ;;  %v1144_v51 = vmov (!%p265_p3), 1966171168  }
   0xa   : > { %505 = vmatprep.subr.bf16.mxu1 (!%p265_p3), %v1097_v15  ;;  %535 = vmatprep.mubr.bf16.mxu1 (!%p265_p3), %v1143_v17  ;;  %v588_v52 = vunpack.c.l.s4 (!%p265_p3), %v1144_v51 }
   0xc   : > { %1058 = vmatpush3.bf16.msra.mxu0 (!%p265_p3), %v1093_v3  ;;  %v589_v57 = vunpack.c.0.s8 (!%p265_p3), %v588_v52 }
   0xd   : > { %506 = vmatpush1.bf16.msra.mxu1 (!%p265_p3), %v1099_v16 }
   0xe   : > { %s1300_s21 = smov (!%p327_p4, %s1130_s21), 1  ;;  %v1257_v63 = vsub.s32 %v589_v57, %v591_v58 }
   0xf   : > { %s1037_s29 = sshll.u32 %s1300_s21, 3  ;;  %s1038_s30 = sshll.u32 %s1300_s21, 1 }
  0x10   : > { %s333_s9 = scalar_lea.vmem %s1286_s0, %s1037_s29  ;;  %s1215_s12 = scalar_lea.vmem %s1290_s4, %s1038_s30 }
  0x11   : > { %s1220_s15 = scalar_lea.vmem %s1291_s5, %s1038_s30  ;;  %s1225_s18 = scalar_lea.vmem %s1292_s6, %s1038_s30  ;;  %373 = vst.msk [vmem:[%s1215_s12] sm:$0x3] %vm1205_vm1, %v1142_v5  ;;  %v376_v6 = vld [vmem:[%s333_s9] sm:$0xff]  ;;  %v377_v7 = vld [vmem:[%s333_s9 + $0x8] sm:$0xff] }
  0x12   : > { %374 = vst.msk [vmem:[%s1220_s15] sm:$0x3] %vm1205_vm1, %v1140_v1  ;;  %375 = vst.msk [vmem:[%s1225_s18] sm:$0x3] %vm1205_vm1, %v1140_v1  ;;  %v378_v8 = vpack.c.bf16 %v377_v7, %v376_v6  ;;  %v379_v9 = vmul.f32 %v376_v6, %v376_v6  ;;  %v380_v10 = vmul.f32 %v377_v7, %v377_v7  ;;  %v609_v6 = vsub.s32 0, %v591_v58 }
  0x13   : > { %v613_v7 = vsub.s32 1, %v591_v58 }
  0x14   : > { %1060 = vmatmul.mubr.msk.bf16.vlgmr.msra.gmra.mrb[0].mxu0 %vm381_vm2, %v378_v8  ;;  %v382_v11 = vsel %vm381_vm2, %v379_v9, 0.0  ;;  %v385_v12 = vsel %vm381_vm2, %v380_v10, 0.0 }
  0x15   : > { %383 = vadd.xlane.f32.xlu0 %v382_v11 }
  0x18   : > { %v569_v3 = vld [vmem:[%s1215_s12] sm:$0x3] }
  0x19   : > { %386 = vadd.xlane.f32.xlu0 %v385_v12  ;;  %v629_v58 = vld [vmem:[%s1220_s15] sm:$0x3] }
  0xa2   : > { %v384_v18 = vpop.xlane.xlu0 %383 }
  0xa3   : > { %v388_v20 = vmax.f32 %v384_v18, 1e-24 }
  0xa5   : > { %1100 = vrsqrt.f32 %v388_v20 }
  0xa6   : > { %v387_v19 = vpop.xlane.xlu0 %386 }
  0xa7   : > { %v389_v21 = vmax.f32 %v387_v19, 1e-24 }
  0xa9   : > { %1102 = vrsqrt.f32 %v389_v21 }
  0xaf   : > { %v1101_v22 = vpop.eup %1100 }
  0xb3   : > { %v1103_v23 = vpop.eup %1102 }
  0xe7   : > { %v445_v24 = vpop.f32.mrb[0].mxu0 }
  0xe8   : > { %v452_v26 = vmul.f32 %v1101_v22, %v445_v24  ;;  %v1061_v27 = vpop.f32.mrb[1].mxu0 }
  0xe9   : > { %v448_v28 = vpop.f32.mrb[2].mxu0 }
  0xea   : > { %v461_v29 = vadd.f32 %v1044_v25, %v452_v26  ;;  %v453_v30 = vmul.f32 %v1103_v23, %v448_v28  ;;  %v1062_v31 = vpop.f32.mrb[3].mxu0 }
  0xec   : > { %v462_v32 = vadd.f32 %v1044_v25, %v453_v30  ;;  %v463_v33 = vmul.f32 %v461_v29, %v461_v29 }
  0xee   : > { %v475_v34 = vpack.c.bf16 %v462_v32, %v461_v29  ;;  %v465_v35 = vsel %vm381_vm2, %v463_v33, 0.0 }
  0xef   : > { %466 = vadd.xlane.f32.xlu1 %v465_v35 }
  0xf0   : > { %1049 = vmatmul.mubr.msk.bf16.vlgmr.msra.gmra.mrb[0].mxu1 %vm381_vm2, %v475_v34 }
 0x17c   : > { %v467_v36 = vpop.xlane.xlu1 %466 }
 0x17d   : > { %v471_v37 = vmax.f32 %v467_v36, 1e-24 }
 0x17f   : > { %1104 = vrsqrt.f32 %v471_v37 }
 0x189   : > { %v1105_v38 = vpop.eup %1104 }
 0x1c3   : > { %v537_v39 = vpop.f32.mrb[0].mxu1 }
 0x1c4   : > { %v546_v40 = vmul.f32 %v1105_v38, %v537_v39  ;;  %v539_v41 = vpop.f32.mrb[1].mxu1 }
 0x1c5   : > { %v547_v42 = vmul.f32 %v1105_v38, %v539_v41  ;;  %v541_v43 = vpop.f32.mrb[2].mxu1 }
 0x1c6   : > { %v570_v44 = vmax.f32 %v546_v40, -1e+30  ;;  %v543_v45 = vpop.f32.mrb[3].mxu1 }
 0x1c7   : > { %v577_v46 = vmax.f32 %v547_v42, -1e+30 }
 0x1c8   : > { %v571_v47 = vrot.slane %v570_v44, 4 }
 0x1c9   : > { %v578_v48 = vrot.slane %v577_v46, 4 }
 0x1ca   : > { %v572_v49 = vmax.f32 %v570_v44, %v571_v47 }
 0x1cb   : > { %v579_v50 = vmax.f32 %v577_v46, %v578_v48 }
 0x1cc   : > { %v573_v53 = vrot.slane %v572_v49, 2 }
 0x1cd   : > { %v580_v54 = vrot.slane %v579_v50, 2 }
 0x1ce   : > { %v574_v55 = vmax.f32 %v572_v49, %v573_v53 }
 0x1cf   : > { %v581_v56 = vmax.f32 %v579_v50, %v580_v54 }
 0x1d0   : > { %v575_v59 = vrot.slane %v574_v55, 1 }
 0x1d1   : > { %v582_v60 = vrot.slane %v581_v56, 1 }
 0x1d2   : > { %v576_v61 = vmax.f32 %v574_v55, %v575_v59 }
 0x1d3   : > { %v583_v62 = vmax.f32 %v581_v56, %v582_v60 }
 0x1d5   : > { %v586_v0 = vcombine.low %v576_v61, %v583_v62  ;;  %v669_v61 = vld [vmem:[%s1225_s18] sm:$0x3] }
 0x1d7   : > { %v593_v1 = vrot.slane %v586_v0, %v1257_v63 }
 0x1d9   : > { %v600_v5 = vrot.slane %v593_v1, %v1257_v63 }
 0x1db   : > { %v602_v8 = vmax.f32 %v569_v3, %v600_v5 }
 0x1dd   : > { %v610_v9 = vrot.slane %v602_v8, %v609_v6  ;;  %v614_v10 = vrot.slane %v602_v8, %v613_v7  ;;  %709 = vst.msk [vmem:[%s1215_s12] sm:$0x3] %vm1205_vm1, %v602_v8  ;;  %v603_v20 = vsub.f32 %v569_v3, %v602_v8 }
 0x1df   : > { %v617_v2 = vsub.f32 %v546_v40, %v610_v9  ;;  %v618_v11 = vsub.f32 %v547_v42, %v614_v10  ;;  %v619_v12 = vsub.f32 -1e+30, %v610_v9  ;;  %v620_v13 = vsub.f32 -1e+30, %v614_v10 }
 0x1e0   : > { %v604_v29 = vmul.f32 1.442695, %v603_v20 }
 0x1e1   : > { %v621_v14 = vmul.f32 1.442695, %v617_v2  ;;  %v623_v15 = vmul.f32 1.442695, %v618_v11  ;;  %v625_v16 = vmul.f32 1.442695, %v619_v12 }
 0x1e2   : > { %v627_v17 = vmul.f32 1.442695, %v620_v13 }
 0x1e3   : > { %1106 = vpow2.f32 %v621_v14 }
 0x1e4   : > { %1108 = vpow2.f32 %v623_v15 }
 0x1e5   : > { %1110 = vpow2.f32 %v625_v16 }
 0x1e6   : > { %1112 = vpow2.f32 %v627_v17 }
 0x1e7   : > { %1114 = vpow2.f32 %v604_v29 }
 0x1ed   : > { %v1107_v18 = vpop.eup %1106 }
 0x1ee   : > { %v1109_v19 = vpop.eup %1108  ;;  %v671_v21 = vmul.f32 %v1107_v18, %v546_v40 }
 0x1ef   : > { %v1111_v22 = vpop.eup %1110  ;;  %v672_v23 = vmul.f32 %v1109_v19, %v547_v42 }
 0x1f0   : > { %v1113_v24 = vpop.eup %1112  ;;  %v631_v25 = vadd.f32 %v1111_v22, %v1107_v18  ;;  %v673_v26 = vmul.f32 -1e+30, %v1111_v22 }
 0x1f1   : > { %v638_v27 = vadd.f32 %v1113_v24, %v1109_v19  ;;  %v674_v28 = vmul.f32 -1e+30, %v1113_v24  ;;  %v1115_v57 = vpop.eup %1114 }
 0x1f2   : > { %v632_v30 = vrot.slane %v631_v25, 4  ;;  %v675_v31 = vadd.f32 %v673_v26, %v671_v21  ;;  %v630_v62 = vmul.f32 %v1115_v57, %v629_v58  ;;  %v670_v5 = vmul.f32 %v1115_v57, %v669_v61 }
 0x1f3   : > { %v639_v32 = vrot.slane %v638_v27, 4  ;;  %v682_v33 = vadd.f32 %v674_v28, %v672_v23 }
 0x1f4   : > { %v633_v34 = vadd.f32 %v632_v30, %v631_v25  ;;  %v676_v35 = vrot.slane %v675_v31, 4 }
 0x1f5   : > { %v640_v36 = vadd.f32 %v639_v32, %v638_v27  ;;  %v683_v37 = vrot.slane %v682_v33, 4 }
 0x1f6   : > { %v634_v38 = vrot.slane %v633_v34, 2  ;;  %v677_v39 = vadd.f32 %v676_v35, %v675_v31 }
 0x1f7   : > { %v641_v40 = vrot.slane %v640_v36, 2  ;;  %v684_v41 = vadd.f32 %v683_v37, %v682_v33 }
 0x1f8   : > { %v635_v42 = vadd.f32 %v634_v38, %v633_v34  ;;  %v678_v43 = vrot.slane %v677_v39, 2 }
 0x1f9   : > { %v642_v44 = vadd.f32 %v641_v40, %v640_v36  ;;  %v685_v45 = vrot.slane %v684_v41, 2 }
 0x1fa   : > { %v636_v46 = vrot.slane %v635_v42, 1  ;;  %v679_v47 = vadd.f32 %v678_v43, %v677_v39 }
 0x1fb   : > { %v643_v48 = vrot.slane %v642_v44, 1  ;;  %v686_v49 = vadd.f32 %v685_v45, %v684_v41 }
 0x1fc   : > { %v637_v50 = vadd.f32 %v636_v46, %v635_v42  ;;  %v680_v51 = vrot.slane %v679_v47, 1 }
 0x1fd   : > { %v644_v52 = vadd.f32 %v643_v48, %v642_v44  ;;  %v687_v53 = vrot.slane %v686_v49, 1 }
 0x1fe   : > { %v681_v54 = vadd.f32 %v680_v51, %v679_v47 }
 0x1ff   : > { %v647_v55 = vcombine.low %v637_v50, %v644_v52  ;;  %v688_v56 = vadd.f32 %v687_v53, %v686_v49 }
 0x201   : > { %v654_v59 = vrot.slane %v647_v55, %v1257_v63  ;;  %v691_v60 = vcombine.low %v681_v54, %v688_v56 }
 0x203   : > { %v661_v0 = vrot.slane %v654_v59, %v1257_v63  ;;  %v698_v1 = vrot.slane %v691_v60, %v1257_v63 }
 0x205   : > { %v663_v3 = vadd.f32 %v661_v0, %v630_v62  ;;  %v705_v6 = vrot.slane %v698_v1, %v1257_v63 }
 0x207   : > { %668 = vst.msk [vmem:[%s1220_s15] sm:$0x3] %vm1205_vm1, %v663_v3  ;;  %v707_v7 = vadd.f32 %v705_v6, %v670_v5 }
 0x209   : > { %708 = vst.msk [vmem:[%s1225_s18] sm:$0x3] %vm1205_vm1, %v707_v7 }
 0x20a PF: > { %s17_s23 = sadd.s32 1, %s1138_s23   ;;  %s1295_s21 = smov %s1134_s22 }
 0x20b   : > { %p14_p5 = scmp.ge.s32.totalorder %s17_s23, 4   ;;  %s1296_s22 = smov %s1298_s24 }
 0x20d   :  { %16 = sbr.rel (!%p14_p5) target bundleno = 2 (0x2), region = 102 }

</bundles_post_ra>
